<compile_context>
chip_gen: v7x
topology: tpu7x:2x2x1
jax: 0.10.0
libtpu: 0.0.40
codegen_flags: <defaults>
</compile_context>

<pallas_src>
import functools

import jax
import jax.numpy as jnp
from jax.experimental import pallas as pl
from jax.experimental.pallas import tpu as pltpu


def _round_up(x, m):
    return (x + m - 1) // m * m


def _label_smoothed_ce_kernel(logits_ref, targets_ref, out_ref, *,
                              n_rows, n_cols, num_classes, ignore_index,
                              smoothing, reduction, tile_rows):
    """Processes one (tile_rows, C) tile; accumulates the loss into SMEM."""
    i = pl.program_id(0)

    @pl.when(i == 0)
    def _init():
        out_ref[0, 0] = 0.0

    # Load the tile; bf16 inputs are cast to f32 *after* the (cheaper) DMA.
    logits = logits_ref[...].astype(jnp.float32)            # (TN, C)
    tgt = targets_ref[...]                                   # (TN, 1) int32

    confidence = 1.0 - smoothing
    smooth_val = smoothing / (num_classes - 1)

    # Algebraic form -- no materialized smoothed-label tensor:
    #   row_loss = -(smooth * sum_c logits + (confidence - smooth) * logits[tgt])
    col = jax.lax.broadcasted_iota(jnp.int32, logits.shape, 1)             # (TN, C)
    tgt_logit = jnp.sum(jnp.where(col == tgt, logits, 0.0),
                        axis=1, keepdims=True)                             # (TN, 1)
    row_sum = jnp.sum(logits, axis=1, keepdims=True)                       # (TN, 1)
    per_row = smooth_val * row_sum + (confidence - smooth_val) * tgt_logit  # (TN, 1)

    # Mask ignored rows and rows past the true N (padded tail tile).
    row_idx = i * tile_rows + jax.lax.broadcasted_iota(jnp.int32, tgt.shape, 0)
    valid = (row_idx < n_rows) & (tgt != ignore_index)
    per_row = jnp.where(valid, per_row, 0.0)

    out_ref[0, 0] += -jnp.sum(per_row)

    if reduction == 'mean':
        # Divide once, at the last grid step, by the GLOBAL element count
        # (never by the block shape -- it would be wrong once tiled).
        inv_denom = 1.0 / float(n_rows * n_cols)

        @pl.when(i == pl.num_programs(0) - 1)
        def _finalize():
            out_ref[0, 0] = out_ref[0, 0] * inv_denom


def label_smoothed_cross_entropy(logits, targets, *, num_classes, ignore_index,
                                 smoothing=0.1, reduction='mean',
                                 tile_rows=None):
    """Forward pass matching LabelSmoothedCrossEntropyLoss (smoothing > 0)."""
    reduction = reduction.lower()
    if reduction not in ('sum', 'mean'):
        raise ValueError(f'Unsupported reduction method {reduction}')
    if smoothing <= 0.0:
        # TODO(synk): plain F.cross_entropy path (smoothing == 0) is not kernelized.
        raise NotImplementedError('only the smoothed (smoothing > 0) path is kernelized')

    N, C = logits.shape
    # Keep the incoming dtype (bf16 stays bf16 -> half the HBM bytes moved);
    # the cast to f32 happens inside the kernel, after the DMA.
    if logits.dtype not in (jnp.bfloat16, jnp.float32):
        logits = logits.astype(jnp.float32)
    targets_2d = targets.astype(jnp.int32).reshape(N, 1)

    itemsize = jnp.dtype(logits.dtype).itemsize
    if tile_rows is None:
        # ~4 MiB of logits per buffer; large enough to amortize the ~0.35us/step
        # grid overhead, small enough that 2x double-buffering fits every gen.
        target_bytes = 4 * 1024 * 1024
        tile_rows = max(8, (target_bytes // max(1, C * itemsize)) // 8 * 8)
    tile_rows = int(max(8, (min(tile_rows, _round_up(N, 8)) // 8) * 8))
    grid = (pl.cdiv(N, tile_rows),)

    kernel = functools.partial(
        _label_smoothed_ce_kernel,
        n_rows=N, n_cols=C, num_classes=num_classes,
        ignore_index=ignore_index, smoothing=float(smoothing),
        reduction=reduction, tile_rows=tile_rows)

    # Double-buffered logits + targets tiles plus slack.
    vmem_bytes = 2 * (tile_rows * C * itemsize + tile_rows * 4) + (256 << 10)
    vmem_limit = int(min(max(2 * vmem_bytes, 32 << 20), 64 << 20))

    out = pl.pallas_call(
        kernel,
        out_shape=jax.ShapeDtypeStruct((1, 1), jnp.float32),
        grid=grid,
        in_specs=[
            # TODO(synk): for very large vocab (C * itemsize >> a few MiB per row
            # tile) add a second 'arbitrary' grid axis that also tiles C.
            pl.BlockSpec((tile_rows, C), lambda i: (i, 0)),
            pl.BlockSpec((tile_rows, 1), lambda i: (i, 0)),
        ],
        # Scalar result accumulated on the cheap SMEM scalar path (not a masked
        # single-lane VMEM store per grid step).
        out_specs=pl.BlockSpec(memory_space=pltpu.MemorySpace.SMEM),
        compiler_params=pltpu.CompilerParams(
            dimension_semantics=('arbitrary',),   # serial scalar accumulation
            vmem_limit_bytes=vmem_limit,
        ),
        cost_estimate=pl.CostEstimate(
            flops=3 * N * C,
            transcendentals=0,
            bytes_accessed=N * C * itemsize + N * 4 + 4,
        ),
    )(logits, targets_2d)
    return out[0, 0]


def _reference(logits, targets, *, num_classes, ignore_index,
               smoothing=0.1, reduction='mean'):
    logits = logits.astype(jnp.float32)
    confidence = 1.0 - smoothing
    smooth_val = smoothing / (num_classes - 1)
    N, C = logits.shape
    lbl = jnp.full((N, C), smooth_val, dtype=jnp.float32)
    lbl = lbl.at[jnp.arange(N), targets].set(confidence)
    lbl = jnp.where((targets == ignore_index)[:, None], 0.0, lbl)
    vals = -lbl * logits
    return jnp.sum(vals) if reduction == 'sum' else jnp.mean(vals)


if __name__ == "__main__":
    key = jax.random.PRNGKey(0)
    N, C = 20, 32                    # batch*seq rows, num_classes (small demo)
    ignore_index = 0
    smoothing = 0.1

    k1, k2 = jax.random.split(key)
    # logits are log-probabilities per the module's docstring
    raw = jax.random.normal(k1, (N, C), dtype=jnp.float32)
    logits = jax.nn.log_softmax(raw, axis=-1)
    targets = jax.random.randint(k2, (N,), 0, C, dtype=jnp.int32)
    targets = targets.at[3].set(ignore_index)     # exercise the ignore path

    # f32 path, both reductions.  tile_rows=8 forces a multi-step grid with a
    # padded tail tile (N=20) so the row masking is exercised.
    for red in ('mean', 'sum'):
        out = label_smoothed_cross_entropy(
            logits, targets, num_classes=C, ignore_index=ignore_index,
            smoothing=smoothing, reduction=red, tile_rows=8)
        out = jax.block_until_ready(out)
        ref = _reference(logits, targets, num_classes=C,
                         ignore_index=ignore_index, smoothing=smoothing,
                         reduction=red)
        assert jnp.allclose(out, ref, rtol=1e-5, atol=1e-6), (red, out, ref)

    # bf16 ingest path (no wrapper upcast; cast to f32 inside the kernel).
    logits_bf16 = logits.astype(jnp.bfloat16)
    out_bf16 = label_smoothed_cross_entropy(
        logits_bf16, targets, num_classes=C, ignore_index=ignore_index,
        smoothing=smoothing, reduction='mean', tile_rows=8)
    out_bf16 = jax.block_until_ready(out_bf16)
    ref_bf16 = _reference(logits_bf16, targets, num_classes=C,
                          ignore_index=ignore_index, smoothing=smoothing,
                          reduction='mean')
    assert jnp.allclose(out_bf16, ref_bf16, rtol=2e-2, atol=1e-3), (out_bf16, ref_bf16)

    print("KERNEL_OK")
</pallas_src>

<mosaic_0001>
module attributes {stable_mosaic.version = 11 : i64} {
  func.func @_label_smoothed_ce_kernel(%arg0: i32, %arg1: memref<8x32xf32, #tpu.memory_space<vmem>>, %arg2: memref<8x1xi32, #tpu.memory_space<vmem>>, %arg3: memref<1x1xf32, #tpu.memory_space<smem>>) attributes {dimension_semantics = [#tpu.dimension_semantics<arbitrary>], iteration_bounds = array<i64: 3>, scalar_prefetch = 0 : i64, scratch_operands = 0 : i64, tpu.core_type = #tpu.core_type<tc>, window_params = [{transform_indices = @transform_0, window_bounds = array<i64: 8, 32>}, {transform_indices = @transform_1, window_bounds = array<i64: 8, 1>}, {transform_indices = @transform_2, window_bounds = array<i64: 1, 1>}]} {
    %c0_i32 = arith.constant 0 : i32
    %0 = arith.cmpi eq, %arg0, %c0_i32 : i32
    %1 = arith.extui %0 : i1 to i32
    %c0_i32_0 = arith.constant 0 : i32
    %2 = arith.cmpi ne, %1, %c0_i32_0 : i32
    scf.if %2 {
      %cst_17 = arith.constant 0.000000e+00 : f32
      %c0_18 = arith.constant 0 : index
      %c0_19 = arith.constant 0 : index
      %41 = memref.load %arg3[%c0_18, %c0_19] : memref<1x1xf32, #tpu.memory_space<smem>>
      memref.store %cst_17, %arg3[%c0_18, %c0_19] : memref<1x1xf32, #tpu.memory_space<smem>>
    } else {
    }
    %c0 = arith.constant 0 : index
    %c0_1 = arith.constant 0 : index
    %3 = vector.load %arg1[%c0, %c0_1] : memref<8x32xf32, #tpu.memory_space<vmem>>, vector<8x32xf32>
    %c0_2 = arith.constant 0 : index
    %c0_3 = arith.constant 0 : index
    %4 = vector.load %arg2[%c0_2, %c0_3] : memref<8x1xi32, #tpu.memory_space<vmem>>, vector<8x1xi32>
    %5 = tpu.iota {dimensions = array<i32: 1>} : vector<8x32xi32>
    %6 = vector.broadcast %4 : vector<8x1xi32> to vector<8x32xi32>
    %7 = arith.cmpi eq, %5, %6 : vector<8x32xi32>
    %cst = arith.constant 0.000000e+00 : f32
    %8 = vector.broadcast %cst : f32 to vector<8x32xf32>
    %9 = arith.select %7, %3, %8 : vector<8x32xi1>, vector<8x32xf32>
    %cst_4 = arith.constant dense<0.000000e+00> : vector<8xf32>
    %10 = vector.multi_reduction <add>, %9, %cst_4 [1] : vector<8x32xf32> to vector<8xf32>
    %11 = vector.shape_cast %10 : vector<8xf32> to vector<8x1xf32>
    %cst_5 = arith.constant dense<0.000000e+00> : vector<8xf32>
    %12 = vector.multi_reduction <add>, %3, %cst_5 [1] : vector<8x32xf32> to vector<8xf32>
    %13 = vector.shape_cast %12 : vector<8xf32> to vector<8x1xf32>
    %cst_6 = arith.constant 0.0032258064 : f32
    %14 = vector.broadcast %cst_6 : f32 to vector<8x1xf32>
    %15 = arith.mulf %14, %13 : vector<8x1xf32>
    %cst_7 = arith.constant 0.896774172 : f32
    %16 = vector.broadcast %cst_7 : f32 to vector<8x1xf32>
    %17 = arith.mulf %16, %11 : vector<8x1xf32>
    %18 = arith.addf %15, %17 : vector<8x1xf32>
    %c8_i32 = arith.constant 8 : i32
    %19 = arith.muli %arg0, %c8_i32 : i32
    %20 = tpu.iota {dimensions = array<i32: 0>} : vector<8x1xi32>
    %21 = vector.broadcast %19 : i32 to vector<8x1xi32>
    %22 = arith.addi %21, %20 : vector<8x1xi32>
    %c20_i32 = arith.constant 20 : i32
    %23 = vector.broadcast %c20_i32 : i32 to vector<8x1xi32>
    %24 = arith.cmpi slt, %22, %23 : vector<8x1xi32>
    %c0_i32_8 = arith.constant 0 : i32
    %25 = vector.broadcast %c0_i32_8 : i32 to vector<8x1xi32>
    %26 = arith.cmpi ne, %4, %25 : vector<8x1xi32>
    %27 = arith.andi %24, %26 : vector<8x1xi1>
    %cst_9 = arith.constant 0.000000e+00 : f32
    %28 = vector.broadcast %cst_9 : f32 to vector<8x1xf32>
    %29 = arith.select %27, %18, %28 : vector<8x1xi1>, vector<8x1xf32>
    %c0_10 = arith.constant 0 : index
    %c0_11 = arith.constant 0 : index
    %30 = memref.load %arg3[%c0_10, %c0_11] : memref<1x1xf32, #tpu.memory_space<smem>>
    %31 = vector.shape_cast %29 : vector<8x1xf32> to vector<1x8x1xf32>
    %cst_12 = arith.constant dense<0.000000e+00> : vector<1xf32>
    %32 = vector.multi_reduction <add>, %31, %cst_12 [1, 2] : vector<1x8x1xf32> to vector<1xf32>
    %33 = vector.shape_cast %32 : vector<1xf32> to vector<1x1x1xf32>
    %34 = vector.extract %33[0, 0, 0] : f32 from vector<1x1x1xf32>
    %cst_13 = arith.constant 0.000000e+00 : f32
    %35 = arith.subf %cst_13, %34 : f32
    %36 = arith.addf %30, %35 : f32
    %c0_14 = arith.constant 0 : index
    %c0_15 = arith.constant 0 : index
    %37 = memref.load %arg3[%c0_14, %c0_15] : memref<1x1xf32, #tpu.memory_space<smem>>
    memref.store %36, %arg3[%c0_14, %c0_15] : memref<1x1xf32, #tpu.memory_space<smem>>
    %c2_i32 = arith.constant 2 : i32
    %38 = arith.cmpi eq, %arg0, %c2_i32 : i32
    %39 = arith.extui %38 : i1 to i32
    %c0_i32_16 = arith.constant 0 : i32
    %40 = arith.cmpi ne, %39, %c0_i32_16 : i32
    scf.if %40 {
      %c0_17 = arith.constant 0 : index
      %c0_18 = arith.constant 0 : index
      %41 = memref.load %arg3[%c0_17, %c0_18] : memref<1x1xf32, #tpu.memory_space<smem>>
      %cst_19 = arith.constant 1.562500e-03 : f32
      %42 = arith.mulf %41, %cst_19 : f32
      %c0_20 = arith.constant 0 : index
      %c0_21 = arith.constant 0 : index
      %43 = memref.load %arg3[%c0_20, %c0_21] : memref<1x1xf32, #tpu.memory_space<smem>>
      memref.store %42, %arg3[%c0_20, %c0_21] : memref<1x1xf32, #tpu.memory_space<smem>>
    } else {
    }
    return
  }
  func.func @transform_0(%arg0: i32) -> (i32, i32) {
    %c0_i32 = arith.constant 0 : i32
    %c0_i32_0 = arith.constant 0 : i32
    return %arg0, %c0_i32 : i32, i32
  }
  func.func @transform_1(%arg0: i32) -> (i32, i32) {
    %c0_i32 = arith.constant 0 : i32
    %c0_i32_0 = arith.constant 0 : i32
    return %arg0, %c0_i32 : i32, i32
  }
  func.func @transform_2(%arg0: i32) -> (i32, i32) {
    %c0_i32 = arith.constant 0 : i32
    %c0_i32_0 = arith.constant 0 : i32
    %c0_i32_1 = arith.constant 0 : i32
    return %c0_i32, %c0_i32_0 : i32, i32
  }
}

</mosaic_0001>

<bundles_post_ra>
// kernel: tpu_custom_call.1
= control target key start
LH: loop header
LB: loop body
LE: loop exit
PB: predicated region body
PF: predicated region fallthrough
CT: control target
= control target key end

     0   :  { %7 = vsyncpa [#allocation3], 0  ;;  %s339_s9 = smov 0   ;;  %s385_s0 = inlined_call_operand.vmem [shape: f32[20,32], index: 0, kind: input, shape index: {}]   ;;  %s386_s1 = inlined_call_operand.vmem [shape: s32[20,1], index: 1, kind: input, shape index: {}]   ;;  %s387_s2 = inlined_call_operand.hbm [shape: f32[1,1], index: 2, kind: output, shape index: {}]  }
   0x1 LB: > { %s345_s10 = sadd.s32 4294967295, %s319_s9   ;;  %p261_p0 = scmp.ge.s32.totalorder %s319_s9, 1  ;;  %s319_s9 = sphi %s339_s9, %s13_s9  }
   0x2   : > { %p116_p1 = scmp.lt.s32.totalorder %s319_s9, 4 }
   0x4   : > { %p117_p2 = pnand %p261_p0, %p116_p1 }
   0x5   : > { %p136_p3 = scmp.lt.s32.totalorder (!%p117_p2), %s345_s10, 2  ;;  %v321_v0 = vmov (!%p117_p2), 0   ;;  %vm159_vm0 = vcmask (!%p117_p2), 261120   ;;  %v152_v4 = vlaneseq (!%p117_p2)  ;;  %s265_s19 = sshll.u32 (!%p117_p2), %s345_s10, 3  ;;  %vm179_vm5 = vcmask (!%p117_p2), 7168  }
   0x6   : > { %120 = sbr.rel (%p117_p2) target bundleno = 514 (0x202), region = 28  ;;  %296 = vset.pattern.permute.xlu0 (!%p117_p2), %v321_v0  ;;  %v172_v10 = vstv (!%p117_p2), %s265_s19  ;;  %p281_p4 = scmp.eq.s32.totalorder (!%p117_p2), %s345_s10, 0 }
   0x7   : > { %v153_v5 = vand.u32 (!%p117_p2), 127, %v152_v4  ;;  %v171_v9 = vshrl.u32 (!%p117_p2), %v152_v4, 7  ;;  %s322_s20 = smov (!%p117_p2), 0.0   ;;  %p282_p5 = scmp.eq.s32.totalorder (!%p117_p2), %s345_s10, 2 }
   0x8   : > { %s297_s28 = scalar_lea.hbm (!%p117_p2), %s387_s2, 16 }
   0x9   : > { %v173_v11 = vadd.s32 (!%p117_p2), %v172_v10, %v171_v9  ;;  %p298_p6 = scmp.ne.s32.totalorder (!%p117_p2), %s387_s2, %s297_s28  ;;  %p303_p9 = scmp.lt.u32.totalorder (!%p117_p2), %s297_s28, %s387_s2 }
   0xb   : > { %vm174_vm3 = vcmp.lt.s32.totalorder (!%p117_p2), %v173_v11, 20  ;;  %p299_p7 = pnand (!%p117_p2), %p298_p6, %p282_p5 }
   0xd   : > { %s137_s11 = scalar_select %p136_p3, %s345_s10, 2 }
   0xe   : > { %274 = sst [smem:[#allocation2]] (%p281_p4), %s322_s20  ;;  %p300_p8 = pneg %p299_p7 }
   0xf   : > { %s262_s12 = sshll.u32 %s137_s11, 3  ;;  %s178_s21 = sld [smem:[#allocation2]] }
  0x10   : > { %s143_s15 = scalar_lea.vmem %s386_s1, %s262_s12  ;;  %s139_s18 = scalar_lea.vmem %s385_s0, %s262_s12 }
  0x11   : > { %v151_v1 = vld [vmem:[%s143_s15] sm:$0xff]  ;;  %p305_p10 = pnand %p303_p9, %p300_p8 }
  0x12   : > { %155 = vperm.xlu0 %296, %v151_v1   ;;  %v150_v2 = vld [vmem:[%s139_s18] sm:$0xff]  ;;  %vm175_vm2 = vcmp.ne.s32.totalorder %v151_v1, 0 }
  0x13   : > { %v163_v3 = vsel %vm159_vm0, %v150_v2, 0.0  ;;  %vm176_vm4 = vmand %vm174_vm3, %vm175_vm2 }
  0x14   : > { %164 = vadd.xlane.f32.xlu1 %v163_v3 }
  0x91   : > { %v156_v6 = vpop.permute.xlu0 %155 }
  0x92   : > { %vm157_vm1 = vcmp.eq.s32.totalorder %v153_v5, %v156_v6 }
  0x93   : > { %v158_v7 = vsel %vm157_vm1, %v150_v2, 0.0 }
  0x94   : > { %v160_v8 = vsel %vm159_vm0, %v158_v7, 0.0 }
  0x95   : > { %161 = vadd.xlane.f32.xlu0 %v160_v8 }
  0xa1   : > { %v165_v12 = vpop.xlane.xlu1 %164 }
  0xa2   : > { %v166_v13 = vmul.f32 0.0032258064, %v165_v12 }
 0x122   : > { %v162_v14 = vpop.xlane.xlu0 %161 }
 0x123   : > { %v167_v15 = vmul.f32 0.8967742, %v162_v14 }
 0x125   : > { %v168_v16 = vadd.f32 %v167_v15, %v166_v13 }
 0x127   : > { %v177_v17 = vsel %vm176_vm4, %v168_v16, 0.0 }
 0x128   : > { %v180_v18 = vsel %vm179_vm5, %v177_v17, 0.0 }
 0x129   : > { %181 = vadd.xlane.f32.xlu1 %v180_v18 }
 0x1b6   : > { %v182_v19 = vpop.xlane.xlu1 %181 }
 0x1b7   : > { %v183_v20 = vrot.slane %v182_v19, 4 }
 0x1b9   : > { %v184_v21 = vadd.f32 %v183_v20, %v182_v19 }
 0x1bb   : > { %v185_v22 = vrot.slane %v184_v21, 2 }
 0x1bd   : > { %v186_v23 = vadd.f32 %v185_v22, %v184_v21 }
 0x1bf   : > { %v187_v24 = vrot.slane %v186_v23, 1 }
 0x1c1   : > { %v188_v25 = vadd.f32 %v187_v24, %v186_v23 }
 0x1c3   : > { %271 = vpush %v188_v25 }
 0x1f4   : > { %s272_s22 = spop %271 }
 0x1f5   : > { %s190_s23 = ssub.f32 0.0, %s272_s22 }
 0x1f7   : > { %s191_s24 = sadd.f32 %s190_s23, %s178_s21 }
 0x1f9   : > { %193 = sst [smem:[#allocation2]] %s191_s24  ;;  %s199_s25 = smul.f32 0.0015625, %s191_s24 }
 0x1fb   : > { %276 = sst [smem:[#allocation2]] (%p282_p5), %s199_s25 }
 0x1fc   : > { %308 = shalt.err (!%p305_p10)
}
 0x1fd   : > { %s323_s5 = smov [#allocation2]  }
 0x1fe   : > { %278 = dma.smem_to_hbm (%p282_p5), %s323_s5, 16, %s387_s2, [#allocation3]  }
 0x1ff   : > { %314 = dma.done.wait (%p282_p5), [#allocation3], 16  }
 0x200   : > { %316 = vsyncadd (%p282_p5), [#allocation3], 4294967280 }
 0x201   : > { %214 = sfence }
 0x202 PF: > { %s13_s9 = sadd.s32 1, %s319_s9  }
 0x203   : > { %p10_p11 = scmp.ge.s32.totalorder %s13_s9, 5  }
 0x205   :  { %12 = sbr.rel (!%p10_p11) target bundleno = 1 (0x1), region = 68 }
 0x20c   :  { %220 = vsyncpa [#allocation3], 1 }
 0x20d   :  { %222 = vsyncpa [#allocation3 + $0x1], 1 }

</bundles_post_ra>
